<compile_context>
chip_gen: v6e
topology: v6e:2x2x1
jax: 0.10.0
libtpu: 0.0.40
codegen_flags: <defaults>
</compile_context>

<pallas_src>
import math
from functools import partial

import jax
import jax.numpy as jnp
from jax.experimental import pallas as pl
from jax.experimental.pallas import tpu as pltpu

# kv_ref scratch carried across the query-block axis => that axis must be "arbitrary".
_QI_SEMANTICS = ("parallel", "arbitrary")


def _flash_layer_kernel(
    x_ref,                       # (S, D) full-sequence input for this batch item
    wq_ref, bq_ref, wkv_ref, bkv_ref,
    wo_ref, bo_ref, w1_ref, b1_ref, w2_ref, b2_ref,
    gamma_ref, beta_ref,
    o_ref,                       # (TQ, D) output tile
    kv_ref,                      # VMEM scratch (S, 2*D) compute_dtype, persists across qi
    attn_ref,                    # VMEM scratch (TQ, D) compute_dtype, per-head output slab
    *, nhead, q_block, eps, compute_dtype,
):
    cdt = compute_dtype
    S, D = x_ref.shape
    TQ = q_block
    hd = D // nhead
    scale = 1.0 / math.sqrt(hd)

    # ---- K/V projection for the whole sequence, once per batch item ------------
    @pl.when(pl.program_id(1) == 0)
    def _compute_kv():
        xf = x_ref[...].astype(cdt)
        kv = (jnp.dot(xf, wkv_ref[...], preferred_element_type=jnp.float32)
              + bkv_ref[...])
        kv_ref[...] = kv.astype(cdt)             # stored in compute_dtype

    # ---- Q projection for this query block (tile sliced from the resident x) ---
    q_start = pl.multiple_of(pl.program_id(1) * TQ, TQ)
    xq = x_ref[pl.ds(q_start, TQ), :].astype(cdt)
    q = jnp.dot(xq, wq_ref[...], preferred_element_type=jnp.float32) + bq_ref[...]
    q = (q * scale).astype(cdt)                  # scale + cast once, not per head

    # ---- per-head attention, writing each head's output into a (TQ, D) slab ----
    for h in range(nhead):                       # static unroll (nhead is small here)
        lo = h * hd
        qh = q[:, lo:lo + hd]                    # (TQ, hd)  compute_dtype
        kh = kv_ref[:, lo:lo + hd]               # (S, hd)   compute_dtype
        vh = kv_ref[:, D + lo:D + lo + hd]       # (S, hd)   compute_dtype

        # q @ k^T without transposing k: contract last axes of both operands.
        s = jax.lax.dot_general(
            qh, kh, (((1,), (1,)), ((), ())),
            preferred_element_type=jnp.float32)                 # (TQ, S) f32

        m = jnp.max(s, axis=-1, keepdims=True)
        p = jnp.exp(s - m)                                      # unnormalized probs
        l = jnp.sum(p, axis=-1, keepdims=True)                  # row sums (TQ, 1)

        oh = jnp.dot(p.astype(cdt), vh,
                     preferred_element_type=jnp.float32)        # (TQ, hd) f32
        oh = oh / l                      # deferred, exact normalization (tiny tile)
        attn_ref[:, lo:lo + hd] = oh.astype(cdt)

    # ---- single full-width output projection (one (TQ,D)@(D,D) MXU matmul) -----
    a = (jnp.dot(attn_ref[...], wo_ref[...], preferred_element_type=jnp.float32)
         + bo_ref[...])                                          # (TQ, D) f32

    # ---- feed-forward (Dropout = identity at inference) ------------------------
    h1 = jnp.maximum(
        jnp.dot(a.astype(cdt), w1_ref[...], preferred_element_type=jnp.float32)
        + b1_ref[...], 0.0)
    ff = (jnp.dot(h1.astype(cdt), w2_ref[...], preferred_element_type=jnp.float32)
          + b2_ref[...])

    y = a + ff                                   # residual around the FFN only

    # ---- post LayerNorm (f32 math on every generation) -------------------------
    mean = jnp.mean(y, axis=-1, keepdims=True)
    var = jnp.mean(jnp.square(y - mean), axis=-1, keepdims=True)
    y = (y - mean) * jax.lax.rsqrt(var + eps)
    y = y * gamma_ref[...] + beta_ref[...]

    o_ref[...] = y.astype(o_ref.dtype)


def _default_vmem_limit_bytes():
    """48 MiB headroom on v7x (64 MiB physical); ~100 MiB on v5e/v6e (128 MiB)."""
    try:
        kind = jax.devices()[0].device_kind.lower()
    except Exception:
        kind = ""
    if "v7" in kind:
        return 48 * 1024 * 1024
    if "v5" in kind or "v6" in kind:
        return 100 * 1024 * 1024
    return 64 * 1024 * 1024


def _pick_q_block(S):
    if S <= 512:
        return S
    cands = [d for d in range(8, 513, 8) if S % d == 0]
    return max(cands) if cands else S


def flash_attention_layer(x, params, *, nhead, eps=1e-5, q_block=None,
                          compute_dtype=jnp.float32, vmem_limit_bytes=None):
    """x: (B, S, D) float32.  params: torch.nn.Linear-layout parameters.

    compute_dtype: dtype of MXU operands. bfloat16 is recommended on v5e, v6e and
    v7x (all have natively-bf16 MXUs); accumulation, softmax and LayerNorm stay f32.
    """
    B, S, D = x.shape
    dff = params["w1"].shape[0]

    if q_block is None:
        q_block = _pick_q_block(S)
    assert S % q_block == 0, "q_block must divide sequence length"
    assert q_block == S or q_block % 8 == 0, "q_block must be sublane aligned"
    nq = S // q_block

    if vmem_limit_bytes is None:
        vmem_limit_bytes = _default_vmem_limit_bytes()

    f32 = jnp.float32
    # Pre-transpose weights once (in_features, out_features) -> plain jnp.dot in kernel.
    wqkv_t = params["wqkv"].T.astype(compute_dtype)          # (D, 3D)
    wq_t, wkv_t = wqkv_t[:, :D], wqkv_t[:, D:]               # (D, D), (D, 2D)
    bq = params["bqkv"][:D].reshape(1, D).astype(f32)
    bkv = params["bqkv"][D:].reshape(1, 2 * D).astype(f32)
    wo_t = params["wo"].T.astype(compute_dtype)              # (D, D)
    bo = params["bo"].reshape(1, D).astype(f32)
    w1_t = params["w1"].T.astype(compute_dtype)              # (D, dff)
    b1 = params["b1"].reshape(1, dff).astype(f32)
    w2_t = params["w2"].T.astype(compute_dtype)              # (dff, D)
    b2 = params["b2"].reshape(1, D).astype(f32)
    gamma = params["gamma"].reshape(1, D).astype(f32)
    beta = params["beta"].reshape(1, D).astype(f32)

    def const_spec(shape):
        zeros = (0,) * len(shape)
        return pl.BlockSpec(shape, lambda b, qi, _z=zeros: _z)

    kernel = partial(_flash_layer_kernel, nhead=nhead, q_block=q_block, eps=eps,
                     compute_dtype=compute_dtype)

    # Advisory cost estimate for the XLA scheduler.
    wbytes = jnp.dtype(compute_dtype).itemsize
    flops = int(B * (2 * S * D * 3 * D          # QKV projection
                     + 4 * S * S * D            # scores + p@v (summed over heads)
                     + 2 * S * D * D            # output projection
                     + 4 * S * D * dff))        # FFN
    transcendentals = int(B * nhead * S * S + 2 * B * S)
    bytes_accessed = int(4 * B * S * D          # x read once per batch item
                         + 4 * B * S * D        # output write
                         + wbytes * (3 * D * D + D * D + 2 * D * dff)   # weights
                         + 4 * (6 * D + dff))   # biases / norm params

    return pl.pallas_call(
        kernel,
        out_shape=jax.ShapeDtypeStruct((B, S, D), x.dtype),
        grid=(B, nq),
        in_specs=[
            # full sequence; index constant in qi -> fetched once per batch item,
            # the query tile is sliced from it in-kernel (no duplicate x stream).
            pl.BlockSpec((pl.Squeezed(), S, D), lambda b, qi: (b, 0, 0)),
            const_spec((D, D)),       const_spec((1, D)),        # Wq^T,  bq
            const_spec((D, 2 * D)),   const_spec((1, 2 * D)),    # Wkv^T, bkv
            const_spec((D, D)),       const_spec((1, D)),        # Wo^T,  bo
            const_spec((D, dff)),     const_spec((1, dff)),      # W1^T,  b1
            const_spec((dff, D)),     const_spec((1, D)),        # W2^T,  b2
            const_spec((1, D)),       const_spec((1, D)),        # gamma, beta
        ],
        out_specs=pl.BlockSpec((pl.Squeezed(), q_block, D), lambda b, qi: (b, qi, 0)),
        scratch_shapes=[
            pltpu.VMEM((S, 2 * D), compute_dtype),     # resident K/V (compute dtype)
            pltpu.VMEM((q_block, D), compute_dtype),   # per-head attention output slab
        ],
        compiler_params=pltpu.CompilerParams(
            dimension_semantics=_QI_SEMANTICS,         # qi must stay "arbitrary"
            vmem_limit_bytes=vmem_limit_bytes),
        cost_estimate=pl.CostEstimate(flops=flops,
                                      transcendentals=transcendentals,
                                      bytes_accessed=bytes_accessed),
    )(x, wq_t, bq, wkv_t, bkv, wo_t, bo, w1_t, b1, w2_t, b2, gamma, beta)


def _reference(x, p, nhead, eps=1e-5):
    """Pure-JAX reference for correctness checking."""
    B, S, D = x.shape
    hd = D // nhead
    qkv = x @ p["wqkv"].T + p["bqkv"]
    q, k, v = qkv[..., :D], qkv[..., D:2 * D], qkv[..., 2 * D:]

    def split(t):  # (B,S,D) -> (B,H,S,hd)
        return t.reshape(B, S, nhead, hd).transpose(0, 2, 1, 3)

    q, k, v = split(q), split(k), split(v)
    s = jnp.einsum("bhqd,bhkd->bhqk", q, k) / math.sqrt(hd)
    pattn = jax.nn.softmax(s, axis=-1)
    o = jnp.einsum("bhqk,bhkd->bhqd", pattn, v).transpose(0, 2, 1, 3).reshape(B, S, D)
    a = o @ p["wo"].T + p["bo"]
    ff = jnp.maximum(a @ p["w1"].T + p["b1"], 0.0) @ p["w2"].T + p["b2"]
    y = a + ff
    mean = y.mean(-1, keepdims=True)
    var = ((y - mean) ** 2).mean(-1, keepdims=True)
    return (y - mean) / jnp.sqrt(var + eps) * p["gamma"] + p["beta"]


if __name__ == "__main__":
    # Small shapes consistent with the module: batch=2, seq=8, d_model=32,
    # nhead=4 (head_dim=8), dim_feedforward=64.
    B, S, D, NHEAD, DFF = 2, 8, 32, 4, 64

    key = jax.random.PRNGKey(0)
    ks = jax.random.split(key, 12)

    def init_w(k, shape, fan_in):
        bound = 1.0 / math.sqrt(fan_in)
        return jax.random.uniform(k, shape, jnp.float32, -bound, bound)

    params = {
        "wqkv":  init_w(ks[0], (3 * D, D), D),
        "bqkv":  init_w(ks[1], (3 * D,), D),
        "wo":    init_w(ks[2], (D, D), D),
        "bo":    init_w(ks[3], (D,), D),
        "w1":    init_w(ks[4], (DFF, D), D),
        "b1":    init_w(ks[5], (DFF,), D),
        "w2":    init_w(ks[6], (D, DFF), DFF),
        "b2":    init_w(ks[7], (D,), DFF),
        "gamma": jnp.ones((D,), jnp.float32),
        "beta":  jnp.zeros((D,), jnp.float32),
    }

    x = jax.random.normal(ks[8], (B, S, D), jnp.float32)

    out = flash_attention_layer(x, params, nhead=NHEAD)
    out = jax.block_until_ready(out)

    ref = _reference(x, params, NHEAD)
    assert out.shape == (B, S, D)
    # Exact softmax normalization now; error is typically <1e-4 in f32 (tolerance
    # kept loose only to absorb MXU f32 matmul decomposition differences vs XLA).
    assert jnp.allclose(out, ref, atol=2e-3, rtol=2e-3), \
        float(jnp.max(jnp.abs(out - ref)))

    print("KERNEL_OK")
</pallas_src>

<mosaic_0001>
module attributes {stable_mosaic.version = 11 : i64} {
  func.func @_flash_layer_kernel(%arg0: i32, %arg1: i32, %arg2: memref<1x8x32xf32, #tpu.memory_space<vmem>>, %arg3: memref<32x32xf32, #tpu.memory_space<vmem>>, %arg4: memref<1x32xf32, #tpu.memory_space<vmem>>, %arg5: memref<32x64xf32, #tpu.memory_space<vmem>>, %arg6: memref<1x64xf32, #tpu.memory_space<vmem>>, %arg7: memref<32x32xf32, #tpu.memory_space<vmem>>, %arg8: memref<1x32xf32, #tpu.memory_space<vmem>>, %arg9: memref<32x64xf32, #tpu.memory_space<vmem>>, %arg10: memref<1x64xf32, #tpu.memory_space<vmem>>, %arg11: memref<64x32xf32, #tpu.memory_space<vmem>>, %arg12: memref<1x32xf32, #tpu.memory_space<vmem>>, %arg13: memref<1x32xf32, #tpu.memory_space<vmem>>, %arg14: memref<1x32xf32, #tpu.memory_space<vmem>>, %arg15: memref<1x8x32xf32, #tpu.memory_space<vmem>>, %arg16: memref<8x64xf32, #tpu.memory_space<vmem>>, %arg17: memref<8x32xf32, #tpu.memory_space<vmem>>) attributes {dimension_semantics = [#tpu.dimension_semantics<parallel>, #tpu.dimension_semantics<arbitrary>], iteration_bounds = array<i64: 2, 1>, scalar_prefetch = 0 : i64, scratch_operands = 2 : i64, tpu.core_type = #tpu.core_type<tc>, window_params = [{transform_indices = @transform_0, window_bounds = array<i64: 1, 8, 32>}, {pipeline_mode = #tpu.pipeline_mode<synchronous>, transform_indices = @transform_1, window_bounds = array<i64: 32, 32>}, {pipeline_mode = #tpu.pipeline_mode<synchronous>, transform_indices = @transform_2, window_bounds = array<i64: 1, 32>}, {pipeline_mode = #tpu.pipeline_mode<synchronous>, transform_indices = @transform_3, window_bounds = array<i64: 32, 64>}, {pipeline_mode = #tpu.pipeline_mode<synchronous>, transform_indices = @transform_4, window_bounds = array<i64: 1, 64>}, {pipeline_mode = #tpu.pipeline_mode<synchronous>, transform_indices = @transform_5, window_bounds = array<i64: 32, 32>}, {pipeline_mode = #tpu.pipeline_mode<synchronous>, transform_indices = @transform_6, window_bounds = array<i64: 1, 32>}, {pipeline_mode = #tpu.pipeline_mode<synchronous>, transform_indices = @transform_7, window_bounds = array<i64: 32, 64>}, {pipeline_mode = #tpu.pipeline_mode<synchronous>, transform_indices = @transform_8, window_bounds = array<i64: 1, 64>}, {pipeline_mode = #tpu.pipeline_mode<synchronous>, transform_indices = @transform_9, window_bounds = array<i64: 64, 32>}, {pipeline_mode = #tpu.pipeline_mode<synchronous>, transform_indices = @transform_10, window_bounds = array<i64: 1, 32>}, {pipeline_mode = #tpu.pipeline_mode<synchronous>, transform_indices = @transform_11, window_bounds = array<i64: 1, 32>}, {pipeline_mode = #tpu.pipeline_mode<synchronous>, transform_indices = @transform_12, window_bounds = array<i64: 1, 32>}, {transform_indices = @transform_13, window_bounds = array<i64: 1, 8, 32>}]} {
    %c0_i32 = arith.constant 0 : i32
    %0 = arith.cmpi eq, %arg1, %c0_i32 : i32
    %1 = arith.extui %0 : i1 to i32
    %c0_i32_0 = arith.constant 0 : i32
    %2 = arith.cmpi ne, %1, %c0_i32_0 : i32
    scf.if %2 {
      %c0_70 = arith.constant 0 : index
      %c0_71 = arith.constant 0 : index
      %c0_72 = arith.constant 0 : index
      %121 = vector.load %arg2[%c0_70, %c0_71, %c0_72] : memref<1x8x32xf32, #tpu.memory_space<vmem>>, vector<1x8x32xf32>
      %122 = vector.shape_cast %121 : vector<1x8x32xf32> to vector<8x32xf32>
      %c0_73 = arith.constant 0 : index
      %c0_74 = arith.constant 0 : index
      %123 = vector.load %arg5[%c0_73, %c0_74] : memref<32x64xf32, #tpu.memory_space<vmem>>, vector<32x64xf32>
      %cst_75 = arith.constant dense<0.000000e+00> : vector<8x64xf32>
      %124 = tpu.matmul %122, %123, %cst_75 {dimension_numbers = #tpu.dot_dimension_numbers<[1], [0], [0], [1], [0, 0, 1, 1], [], []>} : vector<8x32xf32>, vector<32x64xf32>, vector<8x64xf32> -> vector<8x64xf32>
      %c0_76 = arith.constant 0 : index
      %c0_77 = arith.constant 0 : index
      %125 = vector.load %arg6[%c0_76, %c0_77] : memref<1x64xf32, #tpu.memory_space<vmem>>, vector<1x64xf32>
      %126 = vector.broadcast %125 : vector<1x64xf32> to vector<8x64xf32>
      %127 = arith.addf %124, %126 : vector<8x64xf32>
      %c0_78 = arith.constant 0 : index
      %c0_79 = arith.constant 0 : index
      %128 = vector.load %arg16[%c0_78, %c0_79] : memref<8x64xf32, #tpu.memory_space<vmem>>, vector<8x64xf32>
      tpu.vector_store %arg16[%c0_78, %c0_79], %127 {strides = array<i32>} : memref<8x64xf32, #tpu.memory_space<vmem>>, vector<8x64xf32>,
    } else {
    }
    %c8_i32 = arith.constant 8 : i32
    %3 = arith.muli %arg1, %c8_i32 : i32
    %4 = tpu.assume_multiple %3, 8 : i32
    %c0 = arith.constant 0 : index
    %5 = arith.index_cast %4 : i32 to index
    %c0_1 = arith.constant 0 : index
    %6 = vector.load %arg2[%c0, %5, %c0_1] : memref<1x8x32xf32, #tpu.memory_space<vmem>>, vector<1x8x32xf32>
    %7 = vector.shape_cast %6 : vector<1x8x32xf32> to vector<8x32xf32>
    %c0_2 = arith.constant 0 : index
    %c0_3 = arith.constant 0 : index
    %8 = vector.load %arg3[%c0_2, %c0_3] : memref<32x32xf32, #tpu.memory_space<vmem>>, vector<32x32xf32>
    %cst = arith.constant dense<0.000000e+00> : vector<8x32xf32>
    %9 = tpu.matmul %7, %8, %cst {dimension_numbers = #tpu.dot_dimension_numbers<[1], [0], [0], [1], [0, 0, 1, 1], [], []>} : vector<8x32xf32>, vector<32x32xf32>, vector<8x32xf32> -> vector<8x32xf32>
    %c0_4 = arith.constant 0 : index
    %c0_5 = arith.constant 0 : index
    %10 = vector.load %arg4[%c0_4, %c0_5] : memref<1x32xf32, #tpu.memory_space<vmem>>, vector<1x32xf32>
    %11 = vector.broadcast %10 : vector<1x32xf32> to vector<8x32xf32>
    %12 = arith.addf %9, %11 : vector<8x32xf32>
    %cst_6 = arith.constant 0.353553385 : f32
    %13 = vector.broadcast %cst_6 : f32 to vector<8x32xf32>
    %14 = arith.mulf %12, %13 : vector<8x32xf32>
    %15 = vector.extract_strided_slice %14 {offsets = [0, 0], sizes = [8, 8], strides = [1, 1]} : vector<8x32xf32> to vector<8x8xf32>
    %c0_7 = arith.constant 0 : index
    %c0_8 = arith.constant 0 : index
    %16 = vector.load %arg16[%c0_7, %c0_8] : memref<8x64xf32, #tpu.memory_space<vmem>>, vector<8x8xf32>
    %c0_9 = arith.constant 0 : index
    %c32 = arith.constant 32 : index
    %17 = vector.load %arg16[%c0_9, %c32] : memref<8x64xf32, #tpu.memory_space<vmem>>, vector<8x8xf32>
    %cst_10 = arith.constant dense<0.000000e+00> : vector<8x8xf32>
    %18 = tpu.matmul %15, %16, %cst_10 {dimension_numbers = #tpu.dot_dimension_numbers<[1], [1], [0], [0], [0, 0, 1, 0], [], []>} : vector<8x8xf32>, vector<8x8xf32>, vector<8x8xf32> -> vector<8x8xf32>
    %cst_11 = arith.constant dense<0xFF800000> : vector<8xf32>
    %19 = vector.multi_reduction <maximumf>, %18, %cst_11 [1] : vector<8x8xf32> to vector<8xf32>
    %20 = vector.shape_cast %19 : vector<8xf32> to vector<8x1xf32>
    %21 = vector.broadcast %20 : vector<8x1xf32> to vector<8x8xf32>
    %22 = arith.subf %18, %21 : vector<8x8xf32>
    %23 = math.exp %22 : vector<8x8xf32>
    %cst_12 = arith.constant dense<0.000000e+00> : vector<8xf32>
    %24 = vector.multi_reduction <add>, %23, %cst_12 [1] : vector<8x8xf32> to vector<8xf32>
    %25 = vector.shape_cast %24 : vector<8xf32> to vector<8x1xf32>
    %cst_13 = arith.constant dense<0.000000e+00> : vector<8x8xf32>
    %26 = tpu.matmul %23, %17, %cst_13 {dimension_numbers = #tpu.dot_dimension_numbers<[1], [0], [0], [1], [0, 0, 1, 1], [], []>} : vector<8x8xf32>, vector<8x8xf32>, vector<8x8xf32> -> vector<8x8xf32>
    %27 = vector.broadcast %25 : vector<8x1xf32> to vector<8x8xf32>
    %28 = arith.divf %26, %27 : vector<8x8xf32>
    %c0_14 = arith.constant 0 : index
    %c0_15 = arith.constant 0 : index
    %29 = vector.load %arg17[%c0_14, %c0_15] : memref<8x32xf32, #tpu.memory_space<vmem>>, vector<8x8xf32>
    tpu.vector_store %arg17[%c0_14, %c0_15], %28 {strides = array<i32>} : memref<8x32xf32, #tpu.memory_space<vmem>>, vector<8x8xf32>,
    %30 = vector.extract_strided_slice %14 {offsets = [0, 8], sizes = [8, 8], strides = [1, 1]} : vector<8x32xf32> to vector<8x8xf32>
    %c0_16 = arith.constant 0 : index
    %c8 = arith.constant 8 : index
    %31 = vector.load %arg16[%c0_16, %c8] : memref<8x64xf32, #tpu.memory_space<vmem>>, vector<8x8xf32>
    %c0_17 = arith.constant 0 : index
    %c40 = arith.constant 40 : index
    %32 = vector.load %arg16[%c0_17, %c40] : memref<8x64xf32, #tpu.memory_space<vmem>>, vector<8x8xf32>
    %cst_18 = arith.constant dense<0.000000e+00> : vector<8x8xf32>
    %33 = tpu.matmul %30, %31, %cst_18 {dimension_numbers = #tpu.dot_dimension_numbers<[1], [1], [0], [0], [0, 0, 1, 0], [], []>} : vector<8x8xf32>, vector<8x8xf32>, vector<8x8xf32> -> vector<8x8xf32>
    %cst_19 = arith.constant dense<0xFF800000> : vector<8xf32>
    %34 = vector.multi_reduction <maximumf>, %33, %cst_19 [1] : vector<8x8xf32> to vector<8xf32>
    %35 = vector.shape_cast %34 : vector<8xf32> to vector<8x1xf32>
    %36 = vector.broadcast %35 : vector<8x1xf32> to vector<8x8xf32>
    %37 = arith.subf %33, %36 : vector<8x8xf32>
    %38 = math.exp %37 : vector<8x8xf32>
    %cst_20 = arith.constant dense<0.000000e+00> : vector<8xf32>
    %39 = vector.multi_reduction <add>, %38, %cst_20 [1] : vector<8x8xf32> to vector<8xf32>
    %40 = vector.shape_cast %39 : vector<8xf32> to vector<8x1xf32>
    %cst_21 = arith.constant dense<0.000000e+00> : vector<8x8xf32>
    %41 = tpu.matmul %38, %32, %cst_21 {dimension_numbers = #tpu.dot_dimension_numbers<[1], [0], [0], [1], [0, 0, 1, 1], [], []>} : vector<8x8xf32>, vector<8x8xf32>, vector<8x8xf32> -> vector<8x8xf32>
    %42 = vector.broadcast %40 : vector<8x1xf32> to vector<8x8xf32>
    %43 = arith.divf %41, %42 : vector<8x8xf32>
    %c0_22 = arith.constant 0 : index
    %c8_23 = arith.constant 8 : index
    %44 = vector.load %arg17[%c0_22, %c8_23] : memref<8x32xf32, #tpu.memory_space<vmem>>, vector<8x8xf32>
    tpu.vector_store %arg17[%c0_22, %c8_23], %43 {strides = array<i32>} : memref<8x32xf32, #tpu.memory_space<vmem>>, vector<8x8xf32>,
    %45 = vector.extract_strided_slice %14 {offsets = [0, 16], sizes = [8, 8], strides = [1, 1]} : vector<8x32xf32> to vector<8x8xf32>
    %c0_24 = arith.constant 0 : index
    %c16 = arith.constant 16 : index
    %46 = vector.load %arg16[%c0_24, %c16] : memref<8x64xf32, #tpu.memory_space<vmem>>, vector<8x8xf32>
    %c0_25 = arith.constant 0 : index
    %c48 = arith.constant 48 : index
    %47 = vector.load %arg16[%c0_25, %c48] : memref<8x64xf32, #tpu.memory_space<vmem>>, vector<8x8xf32>
    %cst_26 = arith.constant dense<0.000000e+00> : vector<8x8xf32>
    %48 = tpu.matmul %45, %46, %cst_26 {dimension_numbers = #tpu.dot_dimension_numbers<[1], [1], [0], [0], [0, 0, 1, 0], [], []>} : vector<8x8xf32>, vector<8x8xf32>, vector<8x8xf32> -> vector<8x8xf32>
    %cst_27 = arith.constant dense<0xFF800000> : vector<8xf32>
    %49 = vector.multi_reduction <maximumf>, %48, %cst_27 [1] : vector<8x8xf32> to vector<8xf32>
    %50 = vector.shape_cast %49 : vector<8xf32> to vector<8x1xf32>
    %51 = vector.broadcast %50 : vector<8x1xf32> to vector<8x8xf32>
    %52 = arith.subf %48, %51 : vector<8x8xf32>
    %53 = math.exp %52 : vector<8x8xf32>
    %cst_28 = arith.constant dense<0.000000e+00> : vector<8xf32>
    %54 = vector.multi_reduction <add>, %53, %cst_28 [1] : vector<8x8xf32> to vector<8xf32>
    %55 = vector.shape_cast %54 : vector<8xf32> to vector<8x1xf32>
    %cst_29 = arith.constant dense<0.000000e+00> : vector<8x8xf32>
    %56 = tpu.matmul %53, %47, %cst_29 {dimension_numbers = #tpu.dot_dimension_numbers<[1], [0], [0], [1], [0, 0, 1, 1], [], []>} : vector<8x8xf32>, vector<8x8xf32>, vector<8x8xf32> -> vector<8x8xf32>
    %57 = vector.broadcast %55 : vector<8x1xf32> to vector<8x8xf32>
    %58 = arith.divf %56, %57 : vector<8x8xf32>
    %c0_30 = arith.constant 0 : index
    %c16_31 = arith.constant 16 : index
    %59 = vector.load %arg17[%c0_30, %c16_31] : memref<8x32xf32, #tpu.memory_space<vmem>>, vector<8x8xf32>
    tpu.vector_store %arg17[%c0_30, %c16_31], %58 {strides = array<i32>} : memref<8x32xf32, #tpu.memory_space<vmem>>, vector<8x8xf32>,
    %60 = vector.extract_strided_slice %14 {offsets = [0, 24], sizes = [8, 8], strides = [1, 1]} : vector<8x32xf32> to vector<8x8xf32>
    %c0_32 = arith.constant 0 : index
    %c24 = arith.constant 24 : index
    %61 = vector.load %arg16[%c0_32, %c24] : memref<8x64xf32, #tpu.memory_space<vmem>>, vector<8x8xf32>
    %c0_33 = arith.constant 0 : index
    %c56 = arith.constant 56 : index
    %62 = vector.load %arg16[%c0_33, %c56] : memref<8x64xf32, #tpu.memory_space<vmem>>, vector<8x8xf32>
    %cst_34 = arith.constant dense<0.000000e+00> : vector<8x8xf32>
    %63 = tpu.matmul %60, %61, %cst_34 {dimension_numbers = #tpu.dot_dimension_numbers<[1], [1], [0], [0], [0, 0, 1, 0], [], []>} : vector<8x8xf32>, vector<8x8xf32>, vector<8x8xf32> -> vector<8x8xf32>
    %cst_35 = arith.constant dense<0xFF800000> : vector<8xf32>
    %64 = vector.multi_reduction <maximumf>, %63, %cst_35 [1] : vector<8x8xf32> to vector<8xf32>
    %65 = vector.shape_cast %64 : vector<8xf32> to vector<8x1xf32>
    %66 = vector.broadcast %65 : vector<8x1xf32> to vector<8x8xf32>
    %67 = arith.subf %63, %66 : vector<8x8xf32>
    %68 = math.exp %67 : vector<8x8xf32>
    %cst_36 = arith.constant dense<0.000000e+00> : vector<8xf32>
    %69 = vector.multi_reduction <add>, %68, %cst_36 [1] : vector<8x8xf32> to vector<8xf32>
    %70 = vector.shape_cast %69 : vector<8xf32> to vector<8x1xf32>
    %cst_37 = arith.constant dense<0.000000e+00> : vector<8x8xf32>
    %71 = tpu.matmul %68, %62, %cst_37 {dimension_numbers = #tpu.dot_dimension_numbers<[1], [0], [0], [1], [0, 0, 1, 1], [], []>} : vector<8x8xf32>, vector<8x8xf32>, vector<8x8xf32> -> vector<8x8xf32>
    %72 = vector.broadcast %70 : vector<8x1xf32> to vector<8x8xf32>
    %73 = arith.divf %71, %72 : vector<8x8xf32>
    %c0_38 = arith.constant 0 : index
    %c24_39 = arith.constant 24 : index
    %74 = vector.load %arg17[%c0_38, %c24_39] : memref<8x32xf32, #tpu.memory_space<vmem>>, vector<8x8xf32>
    tpu.vector_store %arg17[%c0_38, %c24_39], %73 {strides = array<i32>} : memref<8x32xf32, #tpu.memory_space<vmem>>, vector<8x8xf32>,
    %c0_40 = arith.constant 0 : index
    %c0_41 = arith.constant 0 : index
    %75 = vector.load %arg17[%c0_40, %c0_41] : memref<8x32xf32, #tpu.memory_space<vmem>>, vector<8x32xf32>
    %c0_42 = arith.constant 0 : index
    %c0_43 = arith.constant 0 : index
    %76 = vector.load %arg7[%c0_42, %c0_43] : memref<32x32xf32, #tpu.memory_space<vmem>>, vector<32x32xf32>
    %cst_44 = arith.constant dense<0.000000e+00> : vector<8x32xf32>
    %77 = tpu.matmul %75, %76, %cst_44 {dimension_numbers = #tpu.dot_dimension_numbers<[1], [0], [0], [1], [0, 0, 1, 1], [], []>} : vector<8x32xf32>, vector<32x32xf32>, vector<8x32xf32> -> vector<8x32xf32>
    %c0_45 = arith.constant 0 : index
    %c0_46 = arith.constant 0 : index
    %78 = vector.load %arg8[%c0_45, %c0_46] : memref<1x32xf32, #tpu.memory_space<vmem>>, vector<1x32xf32>
    %79 = vector.broadcast %78 : vector<1x32xf32> to vector<8x32xf32>
    %80 = arith.addf %77, %79 : vector<8x32xf32>
    %c0_47 = arith.constant 0 : index
    %c0_48 = arith.constant 0 : index
    %81 = vector.load %arg9[%c0_47, %c0_48] : memref<32x64xf32, #tpu.memory_space<vmem>>, vector<32x64xf32>
    %cst_49 = arith.constant dense<0.000000e+00> : vector<8x64xf32>
    %82 = tpu.matmul %80, %81, %cst_49 {dimension_numbers = #tpu.dot_dimension_numbers<[1], [0], [0], [1], [0, 0, 1, 1], [], []>} : vector<8x32xf32>, vector<32x64xf32>, vector<8x64xf32> -> vector<8x64xf32>
    %c0_50 = arith.constant 0 : index
    %c0_51 = arith.constant 0 : index
    %83 = vector.load %arg10[%c0_50, %c0_51] : memref<1x64xf32, #tpu.memory_space<vmem>>, vector<1x64xf32>
    %84 = vector.broadcast %83 : vector<1x64xf32> to vector<8x64xf32>
    %85 = arith.addf %82, %84 : vector<8x64xf32>
    %cst_52 = arith.constant 0.000000e+00 : f32
    %86 = vector.broadcast %cst_52 : f32 to vector<8x64xf32>
    %87 = arith.maximumf %85, %86 : vector<8x64xf32>
    %c0_53 = arith.constant 0 : index
    %c0_54 = arith.constant 0 : index
    %88 = vector.load %arg11[%c0_53, %c0_54] : memref<64x32xf32, #tpu.memory_space<vmem>>, vector<64x32xf32>
    %cst_55 = arith.constant dense<0.000000e+00> : vector<8x32xf32>
    %89 = tpu.matmul %87, %88, %cst_55 {dimension_numbers = #tpu.dot_dimension_numbers<[1], [0], [0], [1], [0, 0, 1, 1], [], []>} : vector<8x64xf32>, vector<64x32xf32>, vector<8x32xf32> -> vector<8x32xf32>
    %c0_56 = arith.constant 0 : index
    %c0_57 = arith.constant 0 : index
    %90 = vector.load %arg12[%c0_56, %c0_57] : memref<1x32xf32, #tpu.memory_space<vmem>>, vector<1x32xf32>
    %91 = vector.broadcast %90 : vector<1x32xf32> to vector<8x32xf32>
    %92 = arith.addf %89, %91 : vector<8x32xf32>
    %93 = arith.addf %80, %92 : vector<8x32xf32>
    %cst_58 = arith.constant dense<0.000000e+00> : vector<8xf32>
    %94 = vector.multi_reduction <add>, %93, %cst_58 [1] : vector<8x32xf32> to vector<8xf32>
    %95 = vector.shape_cast %94 : vector<8xf32> to vector<8x1xf32>
    %cst_59 = arith.constant 3.200000e+01 : f32
    %96 = vector.broadcast %cst_59 : f32 to vector<8x1xf32>
    %97 = arith.divf %95, %96 : vector<8x1xf32>
    %98 = vector.broadcast %97 : vector<8x1xf32> to vector<8x32xf32>
    %99 = arith.subf %93, %98 : vector<8x32xf32>
    %100 = arith.mulf %99, %99 : vector<8x32xf32>
    %cst_60 = arith.constant dense<0.000000e+00> : vector<8xf32>
    %101 = vector.multi_reduction <add>, %100, %cst_60 [1] : vector<8x32xf32> to vector<8xf32>
    %102 = vector.shape_cast %101 : vector<8xf32> to vector<8x1xf32>
    %cst_61 = arith.constant 3.200000e+01 : f32
    %103 = vector.broadcast %cst_61 : f32 to vector<8x1xf32>
    %104 = arith.divf %102, %103 : vector<8x1xf32>
    %105 = vector.broadcast %97 : vector<8x1xf32> to vector<8x32xf32>
    %106 = arith.subf %93, %105 : vector<8x32xf32>
    %cst_62 = arith.constant 9.99999974E-6 : f32
    %107 = vector.broadcast %cst_62 : f32 to vector<8x1xf32>
    %108 = arith.addf %104, %107 : vector<8x1xf32>
    %109 = math.rsqrt %108 : vector<8x1xf32>
    %110 = vector.broadcast %109 : vector<8x1xf32> to vector<8x32xf32>
    %111 = arith.mulf %106, %110 : vector<8x32xf32>
    %c0_63 = arith.constant 0 : index
    %c0_64 = arith.constant 0 : index
    %112 = vector.load %arg13[%c0_63, %c0_64] : memref<1x32xf32, #tpu.memory_space<vmem>>, vector<1x32xf32>
    %113 = vector.broadcast %112 : vector<1x32xf32> to vector<8x32xf32>
    %114 = arith.mulf %111, %113 : vector<8x32xf32>
    %c0_65 = arith.constant 0 : index
    %c0_66 = arith.constant 0 : index
    %115 = vector.load %arg14[%c0_65, %c0_66] : memref<1x32xf32, #tpu.memory_space<vmem>>, vector<1x32xf32>
    %116 = vector.broadcast %115 : vector<1x32xf32> to vector<8x32xf32>
    %117 = arith.addf %114, %116 : vector<8x32xf32>
    %c0_67 = arith.constant 0 : index
    %c0_68 = arith.constant 0 : index
    %c0_69 = arith.constant 0 : index
    %118 = vector.load %arg15[%c0_67, %c0_68, %c0_69] : memref<1x8x32xf32, #tpu.memory_space<vmem>>, vector<1x8x32xf32>
    %119 = vector.shape_cast %118 : vector<1x8x32xf32> to vector<8x32xf32>
    %120 = vector.shape_cast %117 : vector<8x32xf32> to vector<1x8x32xf32>
    tpu.vector_store %arg15[%c0_67, %c0_68, %c0_69], %120 {strides = array<i32>} : memref<1x8x32xf32, #tpu.memory_space<vmem>>, vector<1x8x32xf32>,
    return
  }
  func.func @transform_0(%arg0: i32, %arg1: i32) -> (i32, i32, i32) {
    %c0_i32 = arith.constant 0 : i32
    %c0_i32_0 = arith.constant 0 : i32
    %c0_i32_1 = arith.constant 0 : i32
    return %arg0, %c0_i32, %c0_i32_0 : i32, i32, i32
  }
  func.func @transform_1(%arg0: i32, %arg1: i32) -> (i32, i32) {
    %c0_i32 = arith.constant 0 : i32
    %c0_i32_0 = arith.constant 0 : i32
    %c0_i32_1 = arith.constant 0 : i32
    return %c0_i32, %c0_i32_0 : i32, i32
  }
  func.func @transform_2(%arg0: i32, %arg1: i32) -> (i32, i32) {
    %c0_i32 = arith.constant 0 : i32
    %c0_i32_0 = arith.constant 0 : i32
    %c0_i32_1 = arith.constant 0 : i32
    return %c0_i32, %c0_i32_0 : i32, i32
  }
  func.func @transform_3(%arg0: i32, %arg1: i32) -> (i32, i32) {
    %c0_i32 = arith.constant 0 : i32
    %c0_i32_0 = arith.constant 0 : i32
    %c0_i32_1 = arith.constant 0 : i32
    return %c0_i32, %c0_i32_0 : i32, i32
  }
  func.func @transform_4(%arg0: i32, %arg1: i32) -> (i32, i32) {
    %c0_i32 = arith.constant 0 : i32
    %c0_i32_0 = arith.constant 0 : i32
    %c0_i32_1 = arith.constant 0 : i32
    return %c0_i32, %c0_i32_0 : i32, i32
  }
  func.func @transform_5(%arg0: i32, %arg1: i32) -> (i32, i32) {
    %c0_i32 = arith.constant 0 : i32
    %c0_i32_0 = arith.constant 0 : i32
    %c0_i32_1 = arith.constant 0 : i32
    return %c0_i32, %c0_i32_0 : i32, i32
  }
  func.func @transform_6(%arg0: i32, %arg1: i32) -> (i32, i32) {
    %c0_i32 = arith.constant 0 : i32
    %c0_i32_0 = arith.constant 0 : i32
    %c0_i32_1 = arith.constant 0 : i32
    return %c0_i32, %c0_i32_0 : i32, i32
  }
  func.func @transform_7(%arg0: i32, %arg1: i32) -> (i32, i32) {
    %c0_i32 = arith.constant 0 : i32
    %c0_i32_0 = arith.constant 0 : i32
    %c0_i32_1 = arith.constant 0 : i32
    return %c0_i32, %c0_i32_0 : i32, i32
  }
  func.func @transform_8(%arg0: i32, %arg1: i32) -> (i32, i32) {
    %c0_i32 = arith.constant 0 : i32
    %c0_i32_0 = arith.constant 0 : i32
    %c0_i32_1 = arith.constant 0 : i32
    return %c0_i32, %c0_i32_0 : i32, i32
  }
  func.func @transform_9(%arg0: i32, %arg1: i32) -> (i32, i32) {
    %c0_i32 = arith.constant 0 : i32
    %c0_i32_0 = arith.constant 0 : i32
    %c0_i32_1 = arith.constant 0 : i32
    return %c0_i32, %c0_i32_0 : i32, i32
  }
  func.func @transform_10(%arg0: i32, %arg1: i32) -> (i32, i32) {
    %c0_i32 = arith.constant 0 : i32
    %c0_i32_0 = arith.constant 0 : i32
    %c0_i32_1 = arith.constant 0 : i32
    return %c0_i32, %c0_i32_0 : i32, i32
  }
  func.func @transform_11(%arg0: i32, %arg1: i32) -> (i32, i32) {
    %c0_i32 = arith.constant 0 : i32
    %c0_i32_0 = arith.constant 0 : i32
    %c0_i32_1 = arith.constant 0 : i32
    return %c0_i32, %c0_i32_0 : i32, i32
  }
  func.func @transform_12(%arg0: i32, %arg1: i32) -> (i32, i32) {
    %c0_i32 = arith.constant 0 : i32
    %c0_i32_0 = arith.constant 0 : i32
    %c0_i32_1 = arith.constant 0 : i32
    return %c0_i32, %c0_i32_0 : i32, i32
  }
  func.func @transform_13(%arg0: i32, %arg1: i32) -> (i32, i32, i32) {
    %c0_i32 = arith.constant 0 : i32
    %c0_i32_0 = arith.constant 0 : i32
    return %arg0, %arg1, %c0_i32 : i32, i32, i32
  }
}

</mosaic_0001>

<bundles_post_ra>
// kernel: tpu_custom_call.1
= control target key start
LH: loop header
LB: loop body
LE: loop exit
PB: predicated region body
PF: predicated region fallthrough
CT: control target
= control target key end

     0   :  { %s2607_s0 = inlined_call_operand.hbm [shape: f32[2,8,32], index: 0, kind: input, shape index: {}]   ;;  %s2608_s1 = inlined_call_operand.vmem [shape: f32[32,32], index: 1, kind: input, shape index: {}]   ;;  %s2609_s2 = inlined_call_operand.vmem [shape: f32[1,32], index: 2, kind: input, shape index: {}]   ;;  %s2610_s3 = inlined_call_operand.vmem [shape: f32[32,64], index: 3, kind: input, shape index: {}]   ;;  %s2611_s4 = inlined_call_operand.vmem [shape: f32[1,64], index: 4, kind: input, shape index: {}]   ;;  %s2612_s5 = inlined_call_operand.vmem [shape: f32[32,32], index: 5, kind: input, shape index: {}]   ;;  %s2613_s6 = inlined_call_operand.vmem [shape: f32[1,32], index: 6, kind: input, shape index: {}]   ;;  %s2614_s7 = inlined_call_operand.hbm [shape: f32[32,64], index: 7, kind: input, shape index: {}]   ;;  %s2615_s8 = inlined_call_operand.vmem [shape: f32[1,64], index: 8, kind: input, shape index: {}]   ;;  %s2616_s9 = inlined_call_operand.vmem [shape: f32[64,32], index: 9, kind: input, shape index: {}]   ;;  %s2617_s10 = inlined_call_operand.vmem [shape: f32[1,32], index: 10, kind: input, shape index: {}]   ;;  %s2618_s11 = inlined_call_operand.vmem [shape: f32[1,32], index: 11, kind: input, shape index: {}]   ;;  %s2619_s12 = inlined_call_operand.vmem [shape: f32[1,32], index: 12, kind: input, shape index: {}]   ;;  %s2620_s13 = inlined_call_operand.hbm [shape: f32[2,8,32], index: 13, kind: output, shape index: {}]  }
   0x1   :  { %2627 = sst [smem:[#allocation18_spill]] %s2614_s7 }
   0x2   :  { %2628 = sst [smem:[#allocation19_spill]] %s2617_s10 }
   0x3   :  { %2629 = sst [smem:[#allocation20_spill]] %s2618_s11 }
   0x4   :  { %2630 = sst [smem:[#allocation21_spill]] %s2619_s12 }
   0x5   :  { %2631 = sst [smem:[#allocation22_spill]] %s2620_s13 }
   0x6   :  { %18 = vsyncpa [#allocation5], 0 }
   0x7   :  { %20 = vsyncpa [#allocation5 + $0x1], 0 }
   0x8   :  { %21 = vsyncpa [#allocation8], 0 }
   0x9   :  { %22 = vsyncpa [#allocation6], 0 }
   0xa   :  { %24 = vsyncpa [#allocation6 + $0x1], 0  ;;  %s2267_s25 = smov 0   ;;  %s2269_s26 = smov 0  }
   0xb   :  { %s2271_s27 = smov 0   ;;  %s2273_s28 = smov 0  }
   0xc   :  { %s2275_s29 = smov 0   ;;  %s2277_s30 = smov 0  }
   0xd LB: > { %2632 = sst [smem:[#allocation13_spill]] %s2158_s25  ;;  %s1748_s14 = sadd.s32 4294967295, %s2178_s30   ;;  %s2178_s30 = sphi %s2277_s30, %s30_s30   ;;  %s2174_s29 = sphi %s2275_s29, %s2659_s29   ;;  %s2170_s28 = sphi %s2273_s28, %s2658_s28   ;;  %s2166_s27 = sphi %s2271_s27, %s2662_s27   ;;  %s2162_s26 = sphi %s2269_s26, %s2661_s26   ;;  %s2158_s25 = sphi %s2267_s25, %s2660_s25  }
   0xe   : > { %2633 = sst [smem:[#allocation14_spill]] %s2170_s28  ;;  %s1749_s15 = sadd.s32 4294967294, %s2178_s30  }
   0xf   : > { %2634 = sst [smem:[#allocation15_spill]] %s2174_s29  ;;  %p62_p0 = scmp.ne.s32.totalorder %s2162_s26, %s2158_s25 }
  0x10   : > { %p2301_p1 = scmp.eq.s32.totalorder %s1748_s14, 0  ;;  %p2305_p2 = scmp.eq.s32.totalorder %s1748_s14, 1 }
  0x11   : > { %p346_p3 = scmp.eq.s32.totalorder %s1749_s15, 1  ;;  %p1750_p5 = scmp.ge.s32.totalorder %s2178_s30, 1 }
  0x12   : > { %p2311_p4 = por %p2301_p1, %p62_p0  ;;  %p353_p7 = scmp.lt.s32.totalorder %s2178_s30, 3 }
  0x13   : > { %p2316_p6 = por %p346_p3, %p62_p0  ;;  %s2180_s21 = smov [#allocation7]  }
  0x14   : > { %s2637_s18 = scalar_select %p2311_p4, 1, 0 }
  0x15   : > { %s2638_s19 = scalar_select %p2316_p6, 1, 0 }
  0x16   : > { %p2321_p8 = pnand %p1750_p5, %p353_p7  ;;  %s383_s22 = sshll.u32 %s2180_s21, 4  ;;  %s384_s22 = int_to_ptr.vmem [resolvable:$true] %s383_s22 }
  0x17   : > { %2639 = sst [smem:[#allocation16_spill]] %s2638_s19  ;;  %s42_s24 = sadd.s32 1, %s2174_s29 }
  0x18   : > { %p1943_p9 = pneg %p2321_p8  ;;  %s2051_s14 = scalar_lea.vmem %s384_s22, 512 }
  0x19   : > { %p2052_p13 = scmp.ne.s32.totalorder %s384_s22, %s2051_s14  ;;  %p2059_p5 = scmp.lt.s32.totalorder %s384_s22, %s384_s22 }
  0x1a   : > { %p2330_p11 = pnand %p1943_p9, %p2301_p1  ;;  %p2060_p7 = scmp.lt.s32.totalorder %s2051_s14, %s2051_s14 }
  0x1c   : > { %p2042_p12 = pneg %p2330_p11  ;;  %p2061_p6 = por %p2060_p7, %p2059_p5 }
  0x1e   : > { %p2054_p0 = pnand %p2052_p13, %p2042_p12 }
  0x20   : > { %p2055_p3 = pneg %p2054_p0 }
  0x22   : > { %p2062_p4 = pnand %p2061_p6, %p2055_p3 }
  0x24   : > { %2065 = shalt.err (!%p2062_p4)
}
  0x25   : > { %s2181_s15 = smov 128   ;;  %s2182_s21 = smov 8  }
  0x26   : > { %s2642_s7 = sld [smem:[#allocation18_spill]]  ;;  %p44_p6 = scmp.ge.s32.totalorder %s42_s24, 2 }
  0x27   : > { %s49_s14 = sadd.s32 1, %s2166_s27  ;;  %p56_p4 = scmp.ne.s32.totalorder %s2166_s27, %s2162_s26 }
  0x28   : > { %p57_p9 = scmp.eq.s32.totalorder %s2178_s30, 0  ;;  %s2664_s24 = smov (%p44_p6, %s42_s24), 0 }
  0x29   : > { %2643 = sst [smem:[#allocation17_spill]] %s2664_s24  ;;  %p2354_p13 = por %p2305_p2, %p56_p4 }
  0x2a   : > { %p2348_p12 = por %p57_p9, %p56_p4  ;;  %s46_s23 = ssub.s32 %s2174_s29, %s2664_s24 }
  0x2b   : > { %p1956_p0 = scmp.lt.s32.totalorder %s2178_s30, 2  ;;  %s412_s25 = sand.u32 1, %s2166_s27  }
  0x2c   : > { %1946 = dma.hbm_to_vmem [thread:$0]  (!%p2330_p11), %s2642_s7, 512, %s384_s22, [#allocation8], %s2181_s15, %s2181_s15, %s2182_s21  }
  0x2d   : > { %p47_p11 = scmp.eq.s32.totalorder %s46_s23, 0  ;;  %s1753_s19 = sshll.u32 %s412_s25, 3 }
  0x2e   : > { %s1754_s15 = sshll.u32 %s2174_s29, 7  ;;  %s416_s28 = scalar_lea.vmem [#allocation4], %s1753_s19 }
  0x2f   : > { %s2363_s22 = scalar_select %p47_p11, %s2166_s27, %s49_s14  }
  0x30   : > { %s421_s11 = scalar_lea.hbm %s2607_s0, %s1754_s15  ;;  %s423_s10 = sshll.u32 %s416_s28, 4  ;;  %s424_s10 = int_to_ptr.vmem [resolvable:$true] %s423_s10 }
  0x31   : > { %p2371_p2 = pnand %p1956_p0, %p2348_p12  ;;  %s413_s24 = scalar_lea.sflag [#allocation5], %s412_s25 }
  0x32   : > { %s2079_s23 = scalar_lea.vmem %s424_s10, 128  ;;  %s2183_s14 = smov [#allocation4]  }
  0x33   : > { %p2068_p3 = pneg %p2371_p2  ;;  %p2080_p5 = scmp.ne.s32.totalorder %s424_s10, %s2079_s23 }
  0x34   : > { %s2084_s29 = sshll.u32 %s2183_s14, 4  ;;  %s2085_s29 = int_to_ptr.vmem [resolvable:$false] %s2084_s29 }
  0x35   : > { %p2082_p7 = pnand %p2080_p5, %p2068_p3  ;;  %s2086_s7 = scalar_lea.vmem %s2085_s29, 256 }
  0x36   : > { %p2087_p4 = scmp.lt.s32.totalorder %s424_s10, %s2085_s29  ;;  %p2088_p9 = scmp.lt.s32.totalorder %s2086_s7, %s2079_s23 }
  0x37   : > { %p2083_p6 = pneg %p2082_p7 }
  0x38   : > { %p2089_p11 = por %p2088_p9, %p2087_p4 }
  0x3a   : > { %p2090_p10 = pnand %p2089_p11, %p2083_p6 }
  0x3c   : > { %2093 = shalt.err (!%p2090_p10)
}
  0x3d   : > { %1950 = dma.hbm_to_vmem [thread:$0]  (!%p2371_p2), %s421_s11, 128, %s424_s10, %s413_s24  }
  0x3e   : > { %432 = sbr.rel (%p2321_p8) target bundleno = 1989 (0x7c5), region = 72  ;;  %s2382_s13 = sand.u32 (!%p2321_p8), 1, %s2162_s26  }
  0x3f   : > { %s1756_s28 = sshll.u32 (!%p2321_p8), %s2382_s13, 3  ;;  %s435_s25 = scalar_lea.sflag (!%p2321_p8), [#allocation5], %s2382_s13 }
  0x40   : > { %s438_s29 = scalar_lea.vmem (!%p2321_p8), [#allocation4], %s1756_s28  ;;  %p2647_p12 = scmp.ne.s32.totalorder (!%p2321_p8), %s2637_s18, 0 }
  0x43   : > { %2145 = dma.done.wait (%p2647_p12), %s435_s25, 128  }
  0x44   : > { %2147 = vsyncadd (%p2647_p12), %s435_s25, 4294967168 }
  0x45   : > { %2149 = dma.done.wait (%p2301_p1), [#allocation8], 512  }
  0x46   : > { %2151 = vsyncadd (%p2301_p1), [#allocation8], 4294966784  ;;  %v2184_v0 = vmov 0.0   ;;  %vm2185_vm0 = vmmov 0   ;;  %v493_v1 = vld [vmem:[%s2610_s3 + $0x18] sm:$0xff]  ;;  %v492_v2 = vld [vmem:[%s2610_s3 + $0x10] sm:$0xff] }
  0x47   : > { %1832 = vmatprep.subr.mxu1 %v2184_v0  ;;  %1840 = vmatprep.mubr.msk.f32.mxu1 %vm2185_vm0, %v2184_v0  ;;  %v491_v3 = vld [vmem:[%s2610_s3 + $0x8] sm:$0xff]  ;;  %v490_v4 = vld [vmem:[%s2610_s3] sm:$0xff]  ;;  %v489_v5 = vld [vmem:[%s438_s29] sm:$0xff]  ;;  %vm501_vm1 = vcmask 261120   ;;  %vm575_vm2 = vcmask 523264   ;;  %vm667_vm3 = vcmask 64512  }
  0x48   : > { %1854 = vmatprep.subr.mxu0 %v2184_v0  ;;  %1856 = vmatprep.mubr.msk.f32.mxu0 %vm2185_vm0, %v2184_v0  ;;  %v583_v6 = vld [vmem:[%s2608_s1 + $0x18] sm:$0xff]  ;;  %v582_v7 = vld [vmem:[%s2608_s1 + $0x10] sm:$0xff]  ;;  %v581_v8 = vld [vmem:[%s2608_s1 + $0x8] sm:$0xff]  ;;  %s2186_s24 = smov 112   ;;  %s2187_s19 = smov 120   ;;  %vm1003_vm4 = vcmask 130112  }
  0x49   : > { %1833 = vmatpush3.msra.mxu1 %v493_v1  ;;  %v580_v9 = vld [vmem:[%s2608_s1] sm:$0xff]  ;;  %s2188_s15 = smov 104   ;;  %s2189_s21 = smov 96   ;;  %vm1176_vm5 = vcmask 195712   ;;  %vm1349_vm6 = vcmask 261312  }
  0x4a   : > { %1834 = vmatprep.subr.mxu1 %v2184_v0  ;;  %v1759_v10 = vld [vmem:[%s2611_s4] ss:$0 sm:$0xff]  ;;  %s2190_s17 = smov 80   ;;  %s2191_s23 = smov 72  }
  0x4b   : > { %1835 = vmatpush3.msra.mxu1 %v492_v2  ;;  %v1761_v14 = vld [vmem:[%s2609_s2] ss:$0 sm:$0xff]  ;;  %s2192_s14 = smov 88   ;;  %s2648_s10 = sld [smem:[#allocation19_spill]] }
  0x4c   : > { %1836 = vmatprep.subr.mxu1 %v2184_v0  ;;  %s2649_s11 = sld [smem:[#allocation14_spill]]  ;;  %s1643_s18 = scalar_lea.sflag [#allocation6], %s2382_s13 }
  0x4d   : > { %1837 = vmatpush3.msra.mxu1 %v491_v3  ;;  %s2650_s16 = sld [smem:[#allocation20_spill]] }
  0x4e   : > { %1838 = vmatprep.subr.mxu1 %v2184_v0  ;;  %s2652_s25 = sld [smem:[#allocation22_spill]] }
  0x4f   : > { %1839 = vmatpush3.msra.mxu1 %v490_v4 }
  0x50   : > { %1841 = vmatmul.mubr.msk.f32.vlgmr.msra.gmra.mxu1 %vm501_vm1, %v489_v5  ;;  %1843 = vmatprep.subr.mxu1 %v2184_v0 }
  0x51   : > { %1844 = vmatpush3.msra.mxu1 %v583_v6  ;;  %1851 = vmatprep.mubr.msk.f32.mxu1 %vm2185_vm0, %v2184_v0 }
  0x52   : > { %1845 = vmatprep.subr.mxu1 %v2184_v0 }
  0x53   : > { %1846 = vmatpush3.msra.mxu1 %v582_v7  ;;  %v1355_v7 = vld [vmem:[%s2612_s5 + $0x18] sm:$0xff] }
  0x54   : > { %1847 = vmatprep.subr.mxu1 %v2184_v0 }
  0x55   : > { %1848 = vmatpush3.msra.mxu1 %v581_v8  ;;  %v1354_v8 = vld [vmem:[%s2612_s5 + $0x10] sm:$0xff] }
  0x56   : > { %1849 = vmatprep.subr.mxu1 %v2184_v0 }
  0x57   : > { %1850 = vmatpush3.msra.mxu1 %v580_v9 }
  0x58   : > { %1852 = vmatmul.mubr.msk.f32.vlgmr.msra.gmra.mxu1 %vm501_vm1, %v489_v5  ;;  %1859 = vmatprep.subr.mxu1 %v2184_v0 }
  0x59   : > { %1861 = vmatprep.mubr.msk.f32.mxu1 %vm2185_vm0, %v2184_v0 }
 0x110   : > { %v571_v11 = vpop.f32.mrf.mxu1 }
 0x111   : > { %v572_v12 = vadd.f32 %v1759_v10, %v571_v11  ;;  %v1353_v11 = vld [vmem:[%s2612_s5 + $0x8] sm:$0xff] }
 0x112   : > { %v1842_v13 = vpop.f32.mrf.mxu1 }
 0x113   : > { %576 = vst.msk [vmem:[#allocation2] sm:$0xff] %vm575_vm2, %v572_v12 }
 0x118   : > { %v661_v15 = vpop.f32.mrf.mxu1 }
 0x119   : > { %v662_v16 = vadd.f32 %v1761_v14, %v661_v15  ;;  %v1352_v14 = vld [vmem:[%s2612_s5] sm:$0xff] }
 0x11a   : > { %v1853_v17 = vpop.f32.mrf.mxu1  ;;  %v1005_v18 = vld [vmem:[#allocation2] sm:$0xff] }
 0x11b   : > { %v665_v19 = vmul.f32 0.35355338, %v662_v16  ;;  %1009 = vrot.lane.b32.xlu1 %v1005_v18, %s2186_s24  ;;  %836 = vrot.lane.b32.xlu0 %v1005_v18, %s2187_s19 }
 0x11c   : > { %1855 = vmatpush3.xpose.msk.msra.mxu0 %vm667_vm3, %v1005_v18 }
 0x11d   : > { %1864 = vmatprep.subr.mxu0 %v2184_v0 }
 0x11f   : > { %1857 = vmatmul.mubr.msk.f32.vlgmr.msra.gmra.mxu0 %vm667_vm3, %v665_v19  ;;  %1006 = vrot.lane.b32.xlu1 %v665_v19, %s2186_s24  ;;  %s2193_s24 = smov 8  }
 0x120   : > { %833 = vrot.lane.b32.xlu0 %v665_v19, %s2187_s19  ;;  %1866 = vmatprep.mubr.msk.f32.mxu0 %vm2185_vm0, %v2184_v0  ;;  %s2194_s19 = smov 16  }
 0x123   : > { %1179 = vrot.lane.b32.xlu1 %v665_v19, %s2188_s15  ;;  %v1439_v19 = vld [vmem:[#allocation7 + $0x18] sm:$0xff] }
 0x124   : > { %1182 = vrot.lane.b32.xlu0 %v1005_v18, %s2188_s15  ;;  %s2195_s15 = smov 24  }
 0x127   : > { %753 = vrot.lane.b32.xlu1 %v1005_v18, %s2189_s21  ;;  %s1784_s21 = sshll.u32 %s2649_s11, 7 }
 0x128   : > { %s1655_s29 = scalar_lea.hbm %s2652_s25, %s1784_s21 }
 0x18d   : > { %v1010_v20 = vpop.permute.xlu1 %1009  ;;  %v837_v21 = vpop.permute.xlu0 %836 }
 0x18e   : > { %1865 = vmatpush3.xpose.msk.msra.mxu0 %vm667_vm3, %v837_v21 }
 0x18f   : > { %1874 = vmatprep.subr.mxu0 %v2184_v0 }
 0x191   : > { %v1007_v22 = vpop.permute.xlu1 %1006 }
 0x192   : > { %v834_v23 = vpop.permute.xlu0 %833 }
 0x193   : > { %1867 = vmatmul.mubr.msk.f32.vlgmr.msra.gmra.mxu0 %vm667_vm3, %v834_v23 }
 0x194   : > { %1875 = vmatpush3.xpose.msk.msra.mxu0 %vm667_vm3, %v1010_v20  ;;  %1876 = vmatprep.mubr.msk.f32.mxu0 %vm2185_vm0, %v2184_v0  ;;  %v1438_v20 = vld [vmem:[#allocation7 + $0x10] sm:$0xff] }
 0x195   : > { %v1180_v24 = vpop.permute.xlu1 %1179  ;;  %1884 = vmatprep.subr.mxu0 %v2184_v0 }
 0x196   : > { %v1183_v25 = vpop.permute.xlu0 %1182 }
 0x197   : > { %1877 = vmatmul.mubr.msk.f32.vlgmr.msra.gmra.mxu0 %vm667_vm3, %v1007_v22 }
 0x198   : > { %1885 = vmatpush3.xpose.msk.msra.mxu0 %vm667_vm3, %v1183_v25  ;;  %1886 = vmatprep.mubr.msk.f32.mxu0 %vm2185_vm0, %v2184_v0 }
 0x199   : > { %v754_v26 = vpop.permute.xlu1 %753  ;;  %1894 = vmatprep.subr.mxu0 %v2184_v0 }
 0x19a   : > { %1860 = vmatpush3.msra.mxu1 %v754_v26 }
 0x19b   : > { %1887 = vmatmul.mubr.msk.f32.vlgmr.msra.gmra.mxu0 %vm667_vm3, %v1180_v24  ;;  %1869 = vmatprep.subr.mxu1 %v2184_v0 }
 0x19c   : > { %1902 = vmatprep.mubr.msk.f32.mxu0 %vm2185_vm0, %v2184_v0  ;;  %1895 = vmatpush3.msra.mxu0 %v1355_v7 }
 0x19d   : > { %1896 = vmatprep.subr.mxu0 %v2184_v0 }
 0x19e   : > { %1897 = vmatpush3.msra.mxu0 %v1354_v8 }
 0x19f   : > { %1898 = vmatprep.subr.mxu0 %v2184_v0 }
 0x1a0   : > { %1899 = vmatpush3.msra.mxu0 %v1353_v11 }
 0x1a1   : > { %1900 = vmatprep.subr.mxu0 %v2184_v0 }
 0x1a2   : > { %1901 = vmatpush3.msra.mxu0 %v1352_v14 }
 0x1a3   : > { %1916 = vmatprep.subr.mxu0 %v2184_v0 }
 0x1df   : > { %v740_v27 = vpop.f32.mrf.mxu0 }
 0x1e0   : > { %v744_v28 = vsel %vm667_vm3, %v740_v27, -inf }
 0x1e1   : > { %745 = vmax.xlane.f32.xlu0 %v744_v28  ;;  %v1858_v29 = vpop.f32.mrf.mxu0 }
 0x1e2   : > { %v1437_v29 = vld [vmem:[#allocation7 + $0x8] sm:$0xff] }
 0x253   : > { %v908_v30 = vpop.f32.mrf.mxu0 }
 0x254   : > { %v912_v31 = vsel %vm667_vm3, %v908_v30, -inf }
 0x255   : > { %913 = vmax.xlane.f32.xlu1 %v912_v31  ;;  %v1868_v32 = vpop.f32.mrf.mxu0  ;;  %v1528_v31 = vld [vmem:[%s2616_s9 + $0x38] sm:$0xff] }
 0x256   : > { %v1527_v32 = vld [vmem:[%s2616_s9 + $0x30] sm:$0xff] }
 0x257   : > { %v1081_v33 = vpop.f32.mrf.mxu0 }
 0x258   : > { %v1085_v34 = vsel %vm667_vm3, %v1081_v33, -inf }
 0x259   : > { %1086 = vmax.xlane.f32.xlu0 %v1085_v34  ;;  %v1878_v35 = vpop.f32.mrf.mxu0  ;;  %v1525_v34 = vld [vmem:[%s2616_s9 + $0x20] sm:$0xff] }
 0x25a   : > { %v1524_v35 = vld [vmem:[%s2616_s9 + $0x18] sm:$0xff] }
 0x25b   : > { %v1254_v36 = vpop.f32.mrf.mxu0 }
 0x25c   : > { %v1258_v37 = vsel %vm667_vm3, %v1254_v36, -inf }
 0x25d   : > { %1259 = vmax.xlane.f32.xlu0 %v1258_v37  ;;  %v1888_v38 = vpop.f32.mrf.mxu0 }
 0x266   : > { %1094 = vrot.lane.b32.xlu1 %v1005_v18, %s2190_s17  ;;  %s484_s17 = scalar_lea.vmem [#allocation9], %s1756_s28 }
 0x26a   : > { %v746_v39 = vpop.xlane.xlu0 %745  ;;  %1267 = vrot.lane.b32.xlu1 %v1005_v18, %s2191_s23  ;;  %s1657_s23 = sshll.u32 %s484_s17, 4  ;;  %s1658_s23 = int_to_ptr.vmem [resolvable:$true] %s1657_s23 }
 0x26b   : > { %v747_v40 = vsub.f32 %v740_v27, %v746_v39  ;;  %s2094_s20 = scalar_lea.vmem %s1658_s23, 128 }
 0x26c   : > { %p2095_p1 = scmp.ne.s32.totalorder %s1658_s23, %s2094_s20 }
 0x26d   : > { %v748_v41 = vmul.f32 1.442695, %v747_v40  ;;  %v1523_v40 = vld [vmem:[%s2616_s9 + $0x10] sm:$0xff] }
 0x26e   : > { %p2096_p8 = pnand %p2095_p1, %p2354_p13 }
 0x26f   : > { %2022 = vpow2.f32 %v748_v41  ;;  %v1522_v41 = vld [vmem:[%s2616_s9 + $0x8] sm:$0xff] }
 0x270   : > { %p2097_p10 = pneg %p2096_p8 }
 0x273   : > { %921 = vrot.lane.b32.xlu0 %v1005_v18, %s2192_s14 }
 0x27c   : > { %v2023_v42 = vpop.eup %2022 }
 0x27d   : > { %1862 = vmatmul.mubr.msk.f32.vlgmr.msra.gmra.mxu1 %vm667_vm3, %v2023_v42  ;;  %v750_v61 = vsel %vm667_vm3, %v2023_v42, 0.0  ;;  %v1521_v42 = vld [vmem:[%s2616_s9] sm:$0xff] }
 0x27e   : > { %1871 = vmatprep.mubr.msk.f32.mxu1 %vm2185_vm0, %v2184_v0 }
 0x2de   : > { %v914_v43 = vpop.xlane.xlu1 %913 }
 0x2df   : > { %v915_v44 = vsub.f32 %v908_v30, %v914_v43  ;;  %v1436_v30 = vld [vmem:[#allocation7] sm:$0xff] }
 0x2e0   : > { %v1777_v43 = vld [vmem:[%s2615_s8] ss:$0 sm:$0xff] }
 0x2e1   : > { %v916_v45 = vmul.f32 1.442695, %v915_v44 }
 0x2e2   : > { %v1087_v46 = vpop.xlane.xlu0 %1086  ;;  %v1095_v53 = vpop.permute.xlu1 %1094 }
 0x2e3   : > { %2024 = vpow2.f32 %v916_v45  ;;  %v1088_v47 = vsub.f32 %v1081_v33, %v1087_v46  ;;  %v1526_v33 = vld [vmem:[%s2616_s9 + $0x28] sm:$0xff] }
 0x2e5   : > { %v1089_v48 = vmul.f32 1.442695, %v1088_v47 }
 0x2e6   : > { %v1260_v49 = vpop.xlane.xlu0 %1259  ;;  %v1268_v57 = vpop.permute.xlu1 %1267 }
 0x2e7   : > { %2026 = vpow2.f32 %v1089_v48  ;;  %v1261_v50 = vsub.f32 %v1254_v36, %v1260_v49  ;;  %v1775_v36 = vld [vmem:[%s2613_s6] ss:$0 sm:$0xff] }
 0x2e8   : > { %v1779_v48 = vld [vmem:[%s2648_s10] ss:$0 sm:$0xff]  ;;  %s2653_s10 = smov %s2652_s25 }
 0x2e9   : > { %v1262_v51 = vmul.f32 1.442695, %v1261_v50 }
 0x2ea   : > { %v922_v52 = vpop.permute.xlu0 %921 }
 0x2eb   : > { %2028 = vpow2.f32 %v1262_v51  ;;  %1870 = vmatpush3.msra.mxu1 %v922_v52 }
 0x2ec   : > { %1879 = vmatprep.subr.mxu1 %v2184_v0 }
 0x2f0   : > { %v2025_v54 = vpop.eup %2024 }
 0x2f1   : > { %1872 = vmatmul.mubr.msk.f32.vlgmr.msra.gmra.mxu1 %vm667_vm3, %v2025_v54  ;;  %v918_v55 = vsel %vm667_vm3, %v2025_v54, 0.0 }
 0x2f2   : > { %1880 = vmatpush3.msra.mxu1 %v1095_v53  ;;  %919 = vadd.xlane.f32.xlu0 %v918_v55 }
 0x2f3   : > { %1881 = vmatprep.mubr.msk.f32.mxu1 %vm2185_vm0, %v2184_v0  ;;  %1889 = vmatprep.subr.mxu1 %v2184_v0 }
 0x2f4   : > { %v2027_v56 = vpop.eup %2026 }
 0x2f5   : > { %1882 = vmatmul.mubr.msk.f32.vlgmr.msra.gmra.mxu1 %vm667_vm3, %v2027_v56  ;;  %v1091_v58 = vsel %vm667_vm3, %v2027_v56, 0.0 }
 0x2f6   : > { %1890 = vmatpush3.msra.mxu1 %v1268_v57  ;;  %1092 = vadd.xlane.f32.xlu1 %v1091_v58 }
 0x2f7   : > { %1891 = vmatprep.mubr.msk.f32.mxu1 %vm2185_vm0, %v2184_v0  ;;  %1905 = vmatprep.subr.mxu1 %v2184_v0 }
 0x2f8   : > { %v2029_v59 = vpop.eup %2028 }
 0x2f9   : > { %1892 = vmatmul.mubr.msk.f32.vlgmr.msra.gmra.mxu1 %vm667_vm3, %v2029_v59  ;;  %v1264_v60 = vsel %vm667_vm3, %v2029_v59, 0.0 }
 0x2fa   : > { %1265 = vadd.xlane.f32.xlu0 %v1264_v60  ;;  %1913 = vmatprep.mubr.msk.f32.mxu1 %vm2185_vm0, %v2184_v0 }
 0x2fb   : > { %1906 = vmatpush3.msra.mxu1 %v1439_v19 }
 0x2fc   : > { %1907 = vmatprep.subr.mxu1 %v2184_v0 }
 0x2fd   : > { %1908 = vmatpush3.msra.mxu1 %v1438_v20 }
 0x2fe   : > { %751 = vadd.xlane.f32.xlu0 %v750_v61  ;;  %1909 = vmatprep.subr.mxu1 %v2184_v0 }
 0x2ff   : > { %1910 = vmatpush3.msra.mxu1 %v1437_v29 }
 0x300   : > { %1911 = vmatprep.subr.mxu1 %v2184_v0 }
 0x301   : > { %1912 = vmatpush3.msra.mxu1 %v1436_v30 }
 0x33d   : > { %v825_v62 = vpop.f32.mrf.mxu1 }
 0x33f   : > { %v1863_v63 = vpop.f32.mrf.mxu1 }
 0x37b   : > { %v920_v1 = vpop.xlane.xlu0 %919 }
 0x37f   : > { %v1093_v6 = vpop.xlane.xlu1 %1092 }
 0x383   : > { %v1266_v2 = vpop.xlane.xlu0 %1265 }
 0x387   : > { %v752_v3 = vpop.xlane.xlu0 %751 }
 0x388   : > { %2030 = vrcp.f32 %v752_v3 }
 0x389   : > { %2032 = vrcp.f32 %v920_v1 }
 0x38a   : > { %2034 = vrcp.f32 %v1093_v6 }
 0x38b   : > { %2036 = vrcp.f32 %v1266_v2 }
 0x395   : > { %v2031_v4 = vpop.eup %2030 }
 0x396   : > { %v830_v5 = vmul.f32 %v2031_v4, %v825_v62  ;;  %v2033_v9 = vpop.eup %2032  ;;  %v1781_v62 = vld [vmem:[%s2650_s16] ss:$0 sm:$0xff]  ;;  %s2196_s16 = smov [#allocation9]  }
 0x397   : > { %v2035_v15 = vpop.eup %2034  ;;  %s2098_s11 = sshll.u32 %s2196_s16, 4  ;;  %s2099_s11 = int_to_ptr.vmem [resolvable:$false] %s2098_s11 }
 0x398   : > { %831 = vst.msk [vmem:[#allocation3] sm:$0xff] %vm667_vm3, %v830_v5  ;;  %v2037_v21 = vpop.eup %2036  ;;  %s2100_s28 = scalar_lea.vmem %s2099_s11, 256  ;;  %p2101_p0 = scmp.lt.s32.totalorder %s1658_s23, %s2099_s11 }
 0x399   : > { %p2102_p2 = scmp.lt.s32.totalorder %s2100_s28, %s2094_s20 }
 0x39b   : > { %p2103_p3 = por %p2102_p2, %p2101_p0 }
 0x39d   : > { %p2104_p5 = pnand %p2103_p3, %p2097_p10 }
 0x3b1   : > { %v993_v10 = vpop.f32.mrf.mxu1 }
 0x3b2   : > { %v998_v12 = vmul.f32 %v2033_v9, %v993_v10 }
 0x3b3   : > { %v1873_v13 = vpop.f32.mrf.mxu1 }
 0x3b4   : > { %1000 = vrot.lane.b32.xlu1 %v998_v12, %s2193_s24 }
 0x3b5   : > { %v1166_v16 = vpop.f32.mrf.mxu1 }
 0x3b6   : > { %v1171_v17 = vmul.f32 %v2035_v15, %v1166_v16 }
 0x3b7   : > { %v1883_v18 = vpop.f32.mrf.mxu1 }
 0x3b8   : > { %1173 = vrot.lane.b32.xlu0 %v1171_v17, %s2194_s19 }
 0x3b9   : > { %v1339_v22 = vpop.f32.mrf.mxu1 }
 0x3ba   : > { %v1344_v23 = vmul.f32 %v2037_v21, %v1339_v22 }
 0x3bb   : > { %v1893_v24 = vpop.f32.mrf.mxu1 }
 0x3bc   : > { %1346 = vrot.lane.b32.xlu1 %v1344_v23, %s2195_s15  ;;  %s2651_s15 = sld [smem:[#allocation21_spill]] }
 0x3c2   : > { %v1782_v1 = vld [vmem:[%s2651_s15] ss:$0 sm:$0xff] }
 0x426   : > { %v1001_v25 = vpop.permute.xlu1 %1000 }
 0x427   : > { %1004 = vst.msk [vmem:[#allocation3] sm:$0xff] %vm1003_vm4, %v1001_v25 }
 0x42a   : > { %v1174_v26 = vpop.permute.xlu0 %1173 }
 0x42b   : > { %1177 = vst.msk [vmem:[#allocation3] sm:$0xff] %vm1176_vm5, %v1174_v26 }
 0x42e   : > { %v1347_v27 = vpop.permute.xlu1 %1346 }
 0x42f   : > { %1350 = vst.msk [vmem:[#allocation3] sm:$0xff] %vm1349_vm6, %v1347_v27 }
 0x436   : > { %v1351_v28 = vld [vmem:[#allocation3] sm:$0xff] }
 0x437   : > { %1903 = vmatmul.mubr.msk.f32.vlgmr.msra.gmra.mxu0 %vm501_vm1, %v1351_v28 }
 0x438   : > { %1932 = vmatprep.mubr.msk.f32.mxu0 %vm2185_vm0, %v2184_v0  ;;  %1917 = vmatpush3.msra.mxu0 %v1528_v31 }
 0x439   : > { %1918 = vmatprep.subr.mxu0 %v2184_v0 }
 0x43a   : > { %1919 = vmatpush3.msra.mxu0 %v1527_v32 }
 0x43b   : > { %1920 = vmatprep.subr.mxu0 %v2184_v0 }
 0x43c   : > { %1921 = vmatpush3.msra.mxu0 %v1526_v33 }
 0x43d   : > { %1922 = vmatprep.subr.mxu0 %v2184_v0 }
 0x43e   : > { %1923 = vmatpush3.msra.mxu0 %v1525_v34 }
 0x43f   : > { %1924 = vmatprep.subr.mxu0 %v2184_v0 }
 0x440   : > { %1925 = vmatpush3.msra.mxu0 %v1524_v35 }
 0x441   : > { %1926 = vmatprep.subr.mxu0 %v2184_v0 }
 0x442   : > { %1927 = vmatpush3.msra.mxu0 %v1523_v40 }
 0x443   : > { %1928 = vmatprep.subr.mxu0 %v2184_v0 }
 0x444   : > { %1929 = vmatpush3.msra.mxu0 %v1522_v41 }
 0x445   : > { %1930 = vmatprep.subr.mxu0 %v2184_v0 }
 0x446   : > { %1931 = vmatpush3.msra.mxu0 %v1521_v42 }
 0x4f7   : > { %v1432_v37 = vpop.f32.mrf.mxu0 }
 0x4f8   : > { %v1433_v38 = vadd.f32 %v1775_v36, %v1432_v37 }
 0x4f9   : > { %v1904_v39 = vpop.f32.mrf.mxu0 }
 0x4fa   : > { %1914 = vmatmul.mubr.msk.f32.vlgmr.msra.gmra.mxu1 %vm501_vm1, %v1433_v38 }
 0x5ba   : > { %v1516_v44 = vpop.f32.mrf.mxu1 }
 0x5bb   : > { %v1517_v45 = vadd.f32 %v1777_v43, %v1516_v44 }
 0x5bc   : > { %v1915_v46 = vpop.f32.mrf.mxu1 }
 0x5bd   : > { %v1520_v47 = vmax.f32 %v1517_v45, 0.0 }
 0x5bf   : > { %1933 = vmatmul.mubr.msk.f32.vlgmr.msra.gmra.mxu0 %vm575_vm2, %v1520_v47 }
 0x67f   : > { %v1606_v49 = vpop.f32.mrf.mxu0 }
 0x680   : > { %v1607_v50 = vadd.f32 %v1779_v48, %v1606_v49 }
 0x681   : > { %v1934_v51 = vpop.f32.mrf.mxu0 }
 0x682   : > { %v1610_v52 = vadd.f32 %v1607_v50, %v1433_v38 }
 0x684   : > { %v1611_v0 = vsel %vm501_vm1, %v1610_v52, 0.0 }
 0x685   : > { %1612 = vadd.xlane.f32.xlu1 %v1611_v0 }
 0x70e   : > { %v1613_v53 = vpop.xlane.xlu1 %1612 }
 0x70f   : > { %v1615_v54 = vmul.f32 0.03125, %v1613_v53 }
 0x711   : > { %v1616_v55 = vsub.f32 %v1610_v52, %v1615_v54 }
 0x713   : > { %v1617_v56 = vmul.f32 %v1616_v55, %v1616_v55 }
 0x715   : > { %v1618_v57 = vsel %vm501_vm1, %v1617_v56, 0.0 }
 0x716   : > { %1619 = vadd.xlane.f32.xlu0 %v1618_v57 }
 0x79f   : > { %v1620_v58 = vpop.xlane.xlu0 %1619 }
 0x7a0   : > { %v1621_v59 = vmul.f32 0.03125, %v1620_v58 }
 0x7a2   : > { %v1622_v60 = vadd.f32 1e-05, %v1621_v59 }
 0x7a4   : > { %2038 = vrsqrt.f32 %v1622_v60 }
 0x7b1   : > { %v2039_v61 = vpop.eup %2038 }
 0x7b2   : > { %v1624_v63 = vmul.f32 %v2039_v61, %v1616_v55 }
 0x7b4   : > { %v1632_v2 = vmul.f32 %v1781_v62, %v1624_v63 }
 0x7b6   : > { %v1640_v3 = vadd.f32 %v1782_v1, %v1632_v2 }
 0x7b8   : > { %1641 = vst.msk [vmem:[%s484_s17] sm:$0xff] %vm501_vm1, %v1640_v3 }
 0x7b9   : > { %2107 = shalt.err (!%p2104_p5)
}
 0x7ba   : > { %s2108_s24 = scalar_lea.hbm %s1655_s29, 128  ;;  %s2112_s15 = scalar_lea.hbm %s2653_s10, 256 }
 0x7bb   : > { %p2109_p7 = scmp.ne.s32.totalorder %s1655_s29, %s2108_s24  ;;  %p2113_p9 = scmp.lt.s32.totalorder %s1655_s29, %s2653_s10 }
 0x7bc   : > { %p2114_p11 = scmp.lt.s32.totalorder %s2112_s15, %s2108_s24 }
 0x7bd   : > { %p2110_p6 = pnand %p2109_p7, %p2354_p13 }
 0x7be   : > { %p2115_p12 = por %p2114_p11, %p2113_p9 }
 0x7bf   : > { %p2111_p4 = pneg %p2110_p6 }
 0x7c1   : > { %p2116_p1 = pnand %p2115_p12, %p2111_p4 }
 0x7c3   : > { %2119 = shalt.err (!%p2116_p1)
}
 0x7c4   : > { %1941 = dma.vmem_to_hbm [thread:$0]  (%p2354_p13), %s1658_s23, 128, %s1655_s29, %s1643_s18  }
 0x7c5 PF: > { %s2654_s14 = sld [smem:[#allocation13_spill]]  ;;  %p2657_p10 = scmp.ge.s32.totalorder %s2178_s30, 2 }
 0x7c6   : > { %s2655_s7 = sld [smem:[#allocation16_spill]] }
 0x7cb   : > { %s1669_s25 = sand.u32 1, %s2654_s14  }
 0x7cc   : > { %p2656_p8 = scmp.ne.s32.totalorder %s2655_s7, 0  ;;  %s1670_s20 = scalar_lea.sflag [#allocation6], %s1669_s25 }
 0x7ce   : > { %p1952_p0 = pnand %p2657_p10, %p2656_p8 }
 0x7d0   : > { %p1953_p2 = pneg %p1952_p0 }
 0x7d2   : > { %2153 = dma.done.wait (%p1953_p2), %s1670_s20, 128  }
 0x7d3   : > { %2155 = vsyncadd (%p1953_p2), %s1670_s20, 4294967168  ;;  %s30_s30 = sadd.s32 1, %s2178_s30   ;;  %s2658_s28 = sld [smem:[#allocation15_spill]] }
 0x7d4   : > { %p27_p3 = scmp.ge.s32.totalorder %s30_s30, 4   ;;  %s2659_s29 = sld [smem:[#allocation17_spill]] }
 0x7d5   : > { %s2660_s25 = smov %s2162_s26  ;;  %s2661_s26 = smov %s2166_s27 }
 0x7d6   : > { %s2662_s27 = smov %s2363_s22  ;;  %29 = sbr.rel (!%p27_p3) target bundleno = 13 (0xd), region = 126 }
 0x7db   :  { %1675 = vsyncpa [#allocation5], 1 }
 0x7dc   :  { %1677 = vsyncpa [#allocation5 + $0x1], 1 }
 0x7dd   :  { %1678 = vsyncpa [#allocation8], 1 }
 0x7de   :  { %1679 = vsyncpa [#allocation6], 1 }
 0x7df   :  { %1681 = vsyncpa [#allocation6 + $0x1], 1 }

</bundles_post_ra>
